<compile_context>
chip_gen: v6e
topology: v6e:2x2x1
jax: 0.10.0
libtpu: 0.0.40
codegen_flags: <defaults>
</compile_context>

<pallas_src>
import jax
import jax.numpy as jnp
from jax.experimental import pallas as pl
from jax.experimental.pallas import tpu as pltpu


def _scalar_kernel(const_ref, out_ref):
    # Scalar path only: one SMEM load + one SMEM store.
    out_ref[0] = const_ref[0]


# Built once (not per call).  Grid-less, SMEM in/out, zero declared cost.
_scalar_call = pl.pallas_call(
    _scalar_kernel,
    out_shape=jax.ShapeDtypeStruct((1,), jnp.float32),
    in_specs=[pl.BlockSpec(memory_space=pltpu.SMEM)],
    out_specs=pl.BlockSpec(memory_space=pltpu.SMEM),
    cost_estimate=pl.CostEstimate(flops=0, transcendentals=0, bytes_accessed=8),
)


@jax.jit
def scalar_forward(constant_1d: jax.Array) -> jax.Array:
    """Scalar.forward(): return the parameter value as a 0-d float32."""
    out = _scalar_call(constant_1d)
    # Squeeze inside jit so the slice fuses with the call (no extra dispatch).
    return out[0]


class ScalarPallas:
    """JAX/Pallas analogue of the PyTorch `Scalar` module."""

    def __init__(self, init_value: float):
        # Deterministic parameter init (matches torch.tensor(init_value, float32)).
        self.constant = jnp.full((1,), init_value, dtype=jnp.float32)

    def __call__(self) -> jax.Array:
        return scalar_forward(self.constant)


if __name__ == "__main__":
    # PRNGKey only to follow harness convention; the parameter init itself is
    # a deterministic constant, exactly as in the PyTorch module.
    _ = jax.random.PRNGKey(0)

    init_value = 0.5
    module = ScalarPallas(init_value)

    result = module()
    jax.block_until_ready(result)

    expected = jnp.float32(init_value)
    assert result.shape == (), f"expected scalar output, got shape {result.shape}"
    assert result.dtype == jnp.float32, f"expected float32, got {result.dtype}"
    assert jnp.allclose(result, expected), f"expected {expected}, got {result}"

    # Repeated calls must keep working (no donation / no buffer invalidation).
    result2 = module()
    jax.block_until_ready(result2)
    assert jnp.allclose(result2, expected), f"expected {expected}, got {result2}"

    print("KERNEL_OK")
</pallas_src>

<mosaic_0001>
module attributes {stable_mosaic.version = 11 : i64} {
  func.func @_scalar_kernel(%arg0: memref<1xf32, #tpu.memory_space<smem>>, %arg1: memref<1xf32, #tpu.memory_space<smem>>) attributes {dimension_semantics = [], scalar_prefetch = 0 : i64, scratch_operands = 0 : i64, tpu.core_type = #tpu.core_type<tc>} {
    %c0 = arith.constant 0 : index
    %0 = memref.load %arg0[%c0] : memref<1xf32, #tpu.memory_space<smem>>
    %c0_0 = arith.constant 0 : index
    %1 = memref.load %arg1[%c0_0] : memref<1xf32, #tpu.memory_space<smem>>
    memref.store %0, %arg1[%c0_0] : memref<1xf32, #tpu.memory_space<smem>>
    return
  }
}

</mosaic_0001>

<bundles_post_ra>
// kernel: scalar_forward.1
= control target key start
LH: loop header
LB: loop body
LE: loop exit
PB: predicated region body
PF: predicated region fallthrough
CT: control target
= control target key end

     0   :  { %7 = vsyncpa [#allocation4], 0  ;;  %s37_s8 = smov [#allocation3]   ;;  %s54_s0 = inlined_call_operand.<no memory space> [shape: f32[1], index: 0, kind: input, shape index: {}]   ;;  %s55_s1 = inlined_call_operand.hbm [shape: f32[1], index: 1, kind: output, shape index: {}]  }
   0x1   :  { %12 = sst [smem:[#allocation3]] %s54_s0 }
   0x2   :  { %20 = dma.smem_to_hbm %s37_s8, 16, %s55_s1, [#allocation4]  }
   0x3   :  { %35 = dma.done.wait [#allocation4], 16  }
   0x4   :  { %36 = vsyncadd [#allocation4], 4294967280 }
   0x5   :  { %24 = sfence }
   0x6   :  { %25 = vsyncpa [#allocation4], 1 }

</bundles_post_ra>
